<compile_context>
chip_gen: v6e
topology: v6e:2x2x1
jax: 0.10.0
libtpu: 0.0.40
codegen_flags: <defaults>
</compile_context>

<pallas_src>
import jax
import jax.numpy as jnp
import numpy as np
from jax import lax
from jax.experimental import pallas as pl
from jax.experimental.pallas import tpu as pltpu


# -----------------------------------------------------------------------------
# Pass 1: projection MLPs + L2 normalize + temperature folding (batch tiled)
# -----------------------------------------------------------------------------
def _proj_kernel(temp_ref,                          # SMEM (1,) temperature
                 af_ref, tf_ref,                    # (TB, AW) / (TB, TW) bf16
                 wa1_ref, ba1_ref, wa2_ref, ba2_ref,
                 wt1_ref, bt1_ref, wt2_ref, bt2_ref,
                 ae_ref, te_ref):                   # (TB, E) bf16 outputs
    eps_sq = 1e-24                 # F.normalize eps=1e-12 on the norm -> eps^2
    inv_temp = 1.0 / temp_ref[0]   # scalar-unit reciprocal, computed once

    def proj_normalize(x, w1, b1, w2, b2):
        h = jnp.dot(x, w1, preferred_element_type=jnp.float32) + b1
        h = jnp.maximum(h, 0.0).astype(jnp.bfloat16)      # keep MXU in bf16
        e = jnp.dot(h, w2, preferred_element_type=jnp.float32) + b2
        ssq = jnp.sum(e * e, axis=-1, keepdims=True)
        return e * lax.rsqrt(jnp.maximum(ssq, eps_sq))     # single EUP rsqrt

    ae = proj_normalize(af_ref[...], wa1_ref[...], ba1_ref[...],
                        wa2_ref[...], ba2_ref[...])
    te = proj_normalize(tf_ref[...], wt1_ref[...], bt1_ref[...],
                        wt2_ref[...], bt2_ref[...])

    # Fold 1/temperature into the [TB, E] audio embedding instead of scaling
    # the [B, B] similarity matrix later (B/E x fewer VPU multiplies).
    ae_ref[...] = (ae * inv_temp).astype(jnp.bfloat16)
    te_ref[...] = te.astype(jnp.bfloat16)


# -----------------------------------------------------------------------------
# Pass 2: streamed AudioTextContrastive loss + embedding regularization
# -----------------------------------------------------------------------------
def _loss_kernel(ae_ref, te_ref, idxc_ref, idxr_ref,   # inputs
                 loss_ref,                             # (1,1) f32 output
                 m_col, l_col, s_col,                  # (1,B) online-softmax state
                 acc_a2t, acc_abs, acc_sq):            # (1,1) scalar accumulators
    i = pl.program_id(0)
    nb = pl.num_programs(0)
    B, E = te_ref.shape

    @pl.when(i == 0)
    def _init():
        m_col[...] = jnp.full_like(m_col, -jnp.inf)
        l_col[...] = jnp.zeros_like(l_col)
        s_col[...] = jnp.zeros_like(s_col)
        acc_a2t[...] = jnp.zeros_like(acc_a2t)
        acc_abs[...] = jnp.zeros_like(acc_abs)
        acc_sq[...] = jnp.zeros_like(acc_sq)

    ae = ae_ref[...]                                   # (TB, E) bf16, already /temp
    te = te_ref[...]                                   # (B,  E) bf16, resident

    # Single similarity matmul: sim_t2a == sim_a2t.T and the targets are
    # symmetric, so the second direction reduces to a column-wise log-softmax
    # of the same tile.  dot_general contracts last dims -> no explicit .T.
    sim = lax.dot_general(ae, te, (((1,), (1,)), ((), ())),
                          preferred_element_type=jnp.float32)      # (TB, B)

    # sim * soft-targets for this row tile, rebuilt in-kernel from idx vectors.
    # targets = pos / row_count; apply as masked-select * (TB,1) reciprocal so
    # no (TB,B) divide (EUP) is emitted.
    pos = idxc_ref[...] == idxr_ref[...]                            # (TB, B) bool
    cnt = jnp.sum(jnp.where(pos, 1.0, 0.0), axis=-1, keepdims=True)  # (TB, 1)
    sp = jnp.where(pos, sim, 0.0) * (1.0 / cnt)                      # (TB, B)

    # a2t: every tile row sees all B columns -> exact row log-sum-exp.
    m_row = jnp.max(sim, axis=-1, keepdims=True)
    lse_row = m_row + jnp.log(jnp.sum(jnp.exp(sim - m_row), axis=-1, keepdims=True))
    acc_a2t[...] += jnp.sum(lse_row - jnp.sum(sp, axis=-1, keepdims=True))

    # t2a: online (flash-style) column log-sum-exp across row tiles.
    m_new = jnp.maximum(m_col[...], jnp.max(sim, axis=0, keepdims=True))
    l_col[...] = (l_col[...] * jnp.exp(m_col[...] - m_new)
                  + jnp.sum(jnp.exp(sim - m_new), axis=0, keepdims=True))
    m_col[...] = m_new
    s_col[...] += jnp.sum(sp, axis=0, keepdims=True)

    # Embedding-regularization partial sums.  The folded 1/temp factor cancels
    # exactly in mean|ae| / sqrt(sum ae^2), so accumulate on the scaled values.
    a32 = ae.astype(jnp.float32)
    acc_abs[...] += jnp.sum(jnp.abs(a32))
    acc_sq[...] += jnp.sum(a32 * a32)

    @pl.when(i == nb - 1)
    def _finalize():
        lse_col = m_col[...] + jnp.log(l_col[...])                  # (1, B)
        loss_t2a = jnp.mean(lse_col - s_col[...])
        loss_a2t = acc_a2t[...] / B
        t32 = te.astype(jnp.float32)
        reg_a = (acc_abs[...] / (B * E)) / jnp.sqrt(acc_sq[...])
        reg_t = jnp.mean(jnp.abs(t32)) / jnp.sqrt(jnp.sum(t32 * t32))
        loss_ref[...] = 0.5 * (loss_a2t + loss_t2a) + reg_a + reg_t


# -----------------------------------------------------------------------------
# Wrapper (bf16 boundary casts, target idx prep, two pallas_calls)
# -----------------------------------------------------------------------------
def mlclap_loss(audio_feats, text_feats, params, temperature, idx=None,
                tile_b=256):
    # tile_b should be a multiple of 8 (16+ preferred for bf16) and is the main
    # VMEM knob.  v5e/v6e (128 MiB VMEM) comfortably take tile_b=256-512 with
    # embed=1024; on v7x (64 MiB) keep te[B,E] residency + the (tile_b, B) sim
    # tile under ~28-30 MiB (smaller tile_b or raise vmem_limit_bytes).
    B, AW = audio_feats.shape
    TW = text_feats.shape[1]
    E = params["wa2"].shape[1]

    tb = min(tile_b, B)
    assert B % tb == 0, "batch must be a multiple of the batch tile"
    nb = B // tb

    # bf16 at the boundary (MXU-native); biases stay f32 and all matmuls
    # accumulate in f32 via preferred_element_type.
    af = audio_feats.astype(jnp.bfloat16)
    tf = text_feats.astype(jnp.bfloat16)
    wp = {k: (v.astype(jnp.bfloat16) if k.startswith("w") else v.astype(jnp.float32))
          for k, v in params.items()}
    temp = jnp.asarray([temperature], dtype=jnp.float32)

    row_tile = lambda i: (i, 0)
    w_const = lambda i: (0, 0)

    # ---- pass 1: batch-tiled projection MLPs ----
    flops1 = 2 * B * E * (AW + TW + 2 * E)
    bytes1 = 2 * (B * AW + B * TW + (AW + TW + 2 * E) * E + 2 * B * E) + 4 * 4 * E + 4
    ae, te = pl.pallas_call(
        _proj_kernel,
        out_shape=(jax.ShapeDtypeStruct((B, E), jnp.bfloat16),
                   jax.ShapeDtypeStruct((B, E), jnp.bfloat16)),
        grid_spec=pltpu.PrefetchScalarGridSpec(
            num_scalar_prefetch=0,
            grid=(nb,),
            in_specs=[
                pl.BlockSpec(memory_space=pltpu.MemorySpace.SMEM),   # temperature
                pl.BlockSpec((tb, AW), row_tile),                    # audio feats
                pl.BlockSpec((tb, TW), row_tile),                    # text feats
                pl.BlockSpec((AW, E), w_const), pl.BlockSpec((1, E), w_const),
                pl.BlockSpec((E, E), w_const),  pl.BlockSpec((1, E), w_const),
                pl.BlockSpec((TW, E), w_const), pl.BlockSpec((1, E), w_const),
                pl.BlockSpec((E, E), w_const),  pl.BlockSpec((1, E), w_const),
            ],
            out_specs=(pl.BlockSpec((tb, E), row_tile),
                       pl.BlockSpec((tb, E), row_tile)),
        ),
        compiler_params=pltpu.CompilerParams(
            dimension_semantics=("parallel",)),      # row tiles independent
        cost_estimate=pl.CostEstimate(flops=flops1, transcendentals=2 * B,
                                      bytes_accessed=bytes1),
    )(temp, af, tf, wp["wa1"], wp["ba1"], wp["wa2"], wp["ba2"],
      wp["wt1"], wp["bt1"], wp["wt2"], wp["bt2"])

    # ---- pass 2: streamed contrastive loss + embedding regularization ----
    if idx is None:
        idx_vec = jnp.arange(B, dtype=jnp.int32)     # arange -> identity targets
    else:
        idx_vec = jnp.asarray(idx, dtype=jnp.int32).reshape(-1)
    idx_col = idx_vec.reshape(B, 1)
    idx_row = idx_vec.reshape(1, B)

    flops2 = 2 * B * B * E + 10 * B * B
    bytes2 = 2 * (2 * B * E) + 4 * 2 * B + 4
    loss = pl.pallas_call(
        _loss_kernel,
        out_shape=jax.ShapeDtypeStruct((1, 1), jnp.float32),
        grid_spec=pltpu.PrefetchScalarGridSpec(
            num_scalar_prefetch=0,
            grid=(nb,),
            in_specs=[
                pl.BlockSpec((tb, E), lambda i: (i, 0)),   # audio tile (query rows)
                pl.BlockSpec((B, E), lambda i: (0, 0)),    # all text embeds resident
                pl.BlockSpec((tb, 1), lambda i: (i, 0)),   # idx of tile rows
                pl.BlockSpec((1, B), lambda i: (0, 0)),    # idx of all columns
            ],
            out_specs=pl.BlockSpec((1, 1), lambda i: (0, 0)),
            scratch_shapes=[
                pltpu.VMEM((1, B), jnp.float32),   # running column max
                pltpu.VMEM((1, B), jnp.float32),   # running column sum-exp
                pltpu.VMEM((1, B), jnp.float32),   # running sum_i sim*tgt per col
                pltpu.VMEM((1, 1), jnp.float32),   # a2t loss accumulator
                pltpu.VMEM((1, 1), jnp.float32),   # sum |ae|
                pltpu.VMEM((1, 1), jnp.float32),   # sum ae^2
            ]),
        compiler_params=pltpu.CompilerParams(
            dimension_semantics=("arbitrary",)),   # cross-tile accumulation
        cost_estimate=pl.CostEstimate(flops=flops2, transcendentals=2 * B * B,
                                      bytes_accessed=bytes2),
    )(ae, te, idx_col, idx_row)
    return loss[0, 0]


# -----------------------------------------------------------------------------
# Pure-JAX reference mimicking the kernel's bf16-input / f32-accumulate numerics
# -----------------------------------------------------------------------------
def mlclap_loss_ref(audio_feats, text_feats, params, temperature, idx=None):
    f32 = jnp.float32
    bf = lambda x: x.astype(jnp.bfloat16).astype(f32)   # mimic bf16 rounding
    eps_sq = 1e-24

    def proj(x, w1, b1, w2, b2):
        h = bf(x) @ bf(w1) + b1
        h = bf(jnp.maximum(h, 0.0))
        e = h @ bf(w2) + b2
        ssq = jnp.sum(e * e, axis=-1, keepdims=True)
        return e * lax.rsqrt(jnp.maximum(ssq, eps_sq))

    ae = proj(audio_feats, params["wa1"], params["ba1"], params["wa2"], params["ba2"])
    te = proj(text_feats, params["wt1"], params["bt1"], params["wt2"], params["bt2"])

    B = ae.shape[0]
    if idx is not None:
        idxv = jnp.asarray(idx).reshape(-1, 1)
        pos = (idxv == idxv.T).astype(f32)
        tgt = pos / jnp.sum(pos, axis=1, keepdims=True)
    else:
        tgt = jnp.eye(B, dtype=f32)

    inv_temp = 1.0 / jnp.float32(temperature)
    ae_s = bf(ae * inv_temp)
    te_b = bf(te)
    sim_a2t = ae_s @ te_b.T
    sim_t2a = te_b @ ae_s.T

    def soft_ce(sim):
        logp = jax.nn.log_softmax(sim, axis=-1)
        return -jnp.mean(jnp.sum(logp * tgt, axis=-1))

    loss = 0.5 * (soft_ce(sim_a2t) + soft_ce(sim_t2a))
    # embedding regularization (the folded 1/temp factor cancels in the ratio)
    loss = loss + jnp.mean(jnp.abs(ae_s)) / jnp.sqrt(jnp.sum(ae_s * ae_s))
    loss = loss + jnp.mean(jnp.abs(te_b)) / jnp.sqrt(jnp.sum(te_b * te_b))
    return loss


# -----------------------------------------------------------------------------
# Deterministic parameter init (shapes implied by the module __init__)
# -----------------------------------------------------------------------------
def init_params(key, audio_width, text_width, embed_size):
    ks = jax.random.split(key, 8)

    def lin(k, fan_in, fan_out):
        # Kaiming-uniform-ish deterministic init; weight stored [in, out].
        bound = 1.0 / np.sqrt(fan_in)
        return jax.random.uniform(k, (fan_in, fan_out), jnp.float32, -bound, bound)

    return {
        "wa1": lin(ks[0], audio_width, embed_size),
        "ba1": jax.random.uniform(ks[1], (1, embed_size), jnp.float32, -0.1, 0.1),
        "wa2": lin(ks[2], embed_size, embed_size),
        "ba2": jax.random.uniform(ks[3], (1, embed_size), jnp.float32, -0.1, 0.1),
        "wt1": lin(ks[4], text_width, embed_size),
        "bt1": jax.random.uniform(ks[5], (1, embed_size), jnp.float32, -0.1, 0.1),
        "wt2": lin(ks[6], embed_size, embed_size),
        "bt2": jax.random.uniform(ks[7], (1, embed_size), jnp.float32, -0.1, 0.1),
    }


if __name__ == "__main__":
    # Small but hardware-tile-aligned shapes: batch=32 (two 16-row tiles so the
    # cross-tile online accumulation is exercised), widths/embed = 128 lanes.
    B, AUDIO_W, TEXT_W, EMBED, TILE_B = 32, 128, 128, 128, 16
    TEMPERATURE = 0.07

    key = jax.random.PRNGKey(0)
    k_af, k_tf, k_p = jax.random.split(key, 3)

    audio_feats = jax.random.normal(k_af, (B, AUDIO_W), jnp.float32)  # encoder output
    text_feats = jax.random.normal(k_tf, (B, TEXT_W), jnp.float32)    # encoder output
    params = init_params(k_p, AUDIO_W, TEXT_W, EMBED)

    # Case 1: idx=None -> diagonal (one-hot) soft targets.
    loss = mlclap_loss(audio_feats, text_feats, params, TEMPERATURE,
                       idx=None, tile_b=TILE_B)
    loss = jax.block_until_ready(loss)
    loss_ref = mlclap_loss_ref(audio_feats, text_feats, params, TEMPERATURE, idx=None)
    np.testing.assert_allclose(np.asarray(loss), np.asarray(loss_ref),
                               rtol=2e-3, atol=2e-3)

    # Case 2: grouped idx (duplicates spanning the tile boundary) -> soft targets.
    idx = jnp.arange(B, dtype=jnp.int32) // 3
    loss_i = mlclap_loss(audio_feats, text_feats, params, TEMPERATURE,
                         idx=idx, tile_b=TILE_B)
    loss_i = jax.block_until_ready(loss_i)
    loss_i_ref = mlclap_loss_ref(audio_feats, text_feats, params, TEMPERATURE, idx=idx)
    np.testing.assert_allclose(np.asarray(loss_i), np.asarray(loss_i_ref),
                               rtol=2e-3, atol=2e-3)

    print("KERNEL_OK")
</pallas_src>

<mosaic_0001>
module attributes {stable_mosaic.version = 11 : i64} {
  func.func @_proj_kernel(%arg0: i32, %arg1: memref<1xf32, #tpu.memory_space<smem>>, %arg2: memref<16x128xbf16, #tpu.memory_space<vmem>>, %arg3: memref<16x128xbf16, #tpu.memory_space<vmem>>, %arg4: memref<128x128xbf16, #tpu.memory_space<vmem>>, %arg5: memref<1x128xf32, #tpu.memory_space<vmem>>, %arg6: memref<128x128xbf16, #tpu.memory_space<vmem>>, %arg7: memref<1x128xf32, #tpu.memory_space<vmem>>, %arg8: memref<128x128xbf16, #tpu.memory_space<vmem>>, %arg9: memref<1x128xf32, #tpu.memory_space<vmem>>, %arg10: memref<128x128xbf16, #tpu.memory_space<vmem>>, %arg11: memref<1x128xf32, #tpu.memory_space<vmem>>, %arg12: memref<16x128xbf16, #tpu.memory_space<vmem>>, %arg13: memref<16x128xbf16, #tpu.memory_space<vmem>>) attributes {dimension_semantics = [#tpu.dimension_semantics<parallel>], iteration_bounds = array<i64: 2>, scalar_prefetch = 0 : i64, scratch_operands = 0 : i64, tpu.core_type = #tpu.core_type<tc>, window_params = [{transform_indices = @transform_0, window_bounds = array<i64: 1>}, {transform_indices = @transform_1, window_bounds = array<i64: 16, 128>}, {transform_indices = @transform_2, window_bounds = array<i64: 16, 128>}, {pipeline_mode = #tpu.pipeline_mode<synchronous>, transform_indices = @transform_3, window_bounds = array<i64: 128, 128>}, {pipeline_mode = #tpu.pipeline_mode<synchronous>, transform_indices = @transform_4, window_bounds = array<i64: 1, 128>}, {pipeline_mode = #tpu.pipeline_mode<synchronous>, transform_indices = @transform_5, window_bounds = array<i64: 128, 128>}, {pipeline_mode = #tpu.pipeline_mode<synchronous>, transform_indices = @transform_6, window_bounds = array<i64: 1, 128>}, {pipeline_mode = #tpu.pipeline_mode<synchronous>, transform_indices = @transform_7, window_bounds = array<i64: 128, 128>}, {pipeline_mode = #tpu.pipeline_mode<synchronous>, transform_indices = @transform_8, window_bounds = array<i64: 1, 128>}, {pipeline_mode = #tpu.pipeline_mode<synchronous>, transform_indices = @transform_9, window_bounds = array<i64: 128, 128>}, {pipeline_mode = #tpu.pipeline_mode<synchronous>, transform_indices = @transform_10, window_bounds = array<i64: 1, 128>}, {transform_indices = @transform_11, window_bounds = array<i64: 16, 128>}, {transform_indices = @transform_12, window_bounds = array<i64: 16, 128>}]} {
    %c0 = arith.constant 0 : index
    %0 = memref.load %arg1[%c0] : memref<1xf32, #tpu.memory_space<smem>>
    %cst = arith.constant 1.000000e+00 : f32
    %1 = arith.divf %cst, %0 : f32
    %c0_0 = arith.constant 0 : index
    %c0_1 = arith.constant 0 : index
    %2 = vector.load %arg2[%c0_0, %c0_1] : memref<16x128xbf16, #tpu.memory_space<vmem>>, vector<16x128xbf16>
    %c0_2 = arith.constant 0 : index
    %c0_3 = arith.constant 0 : index
    %3 = vector.load %arg4[%c0_2, %c0_3] : memref<128x128xbf16, #tpu.memory_space<vmem>>, vector<128x128xbf16>
    %c0_4 = arith.constant 0 : index
    %c0_5 = arith.constant 0 : index
    %4 = vector.load %arg5[%c0_4, %c0_5] : memref<1x128xf32, #tpu.memory_space<vmem>>, vector<1x128xf32>
    %c0_6 = arith.constant 0 : index
    %c0_7 = arith.constant 0 : index
    %5 = vector.load %arg6[%c0_6, %c0_7] : memref<128x128xbf16, #tpu.memory_space<vmem>>, vector<128x128xbf16>
    %c0_8 = arith.constant 0 : index
    %c0_9 = arith.constant 0 : index
    %6 = vector.load %arg7[%c0_8, %c0_9] : memref<1x128xf32, #tpu.memory_space<vmem>>, vector<1x128xf32>
    %cst_10 = arith.constant dense<0.000000e+00> : vector<16x128xf32>
    %7 = tpu.matmul %2, %3, %cst_10 {dimension_numbers = #tpu.dot_dimension_numbers<[1], [0], [0], [1], [0, 0, 1, 1], [], []>} : vector<16x128xbf16>, vector<128x128xbf16>, vector<16x128xf32> -> vector<16x128xf32>
    %8 = vector.broadcast %4 : vector<1x128xf32> to vector<16x128xf32>
    %9 = arith.addf %7, %8 : vector<16x128xf32>
    %cst_11 = arith.constant 0.000000e+00 : f32
    %10 = vector.broadcast %cst_11 : f32 to vector<16x128xf32>
    %11 = arith.maximumf %9, %10 : vector<16x128xf32>
    %12 = arith.truncf %11 : vector<16x128xf32> to vector<16x128xbf16>
    %cst_12 = arith.constant dense<0.000000e+00> : vector<16x128xf32>
    %13 = tpu.matmul %12, %5, %cst_12 {dimension_numbers = #tpu.dot_dimension_numbers<[1], [0], [0], [1], [0, 0, 1, 1], [], []>} : vector<16x128xbf16>, vector<128x128xbf16>, vector<16x128xf32> -> vector<16x128xf32>
    %14 = vector.broadcast %6 : vector<1x128xf32> to vector<16x128xf32>
    %15 = arith.addf %13, %14 : vector<16x128xf32>
    %16 = arith.mulf %15, %15 : vector<16x128xf32>
    %cst_13 = arith.constant dense<0.000000e+00> : vector<16xf32>
    %17 = vector.multi_reduction <add>, %16, %cst_13 [1] : vector<16x128xf32> to vector<16xf32>
    %18 = vector.shape_cast %17 : vector<16xf32> to vector<16x1xf32>
    %cst_14 = arith.constant 1.000000e-24 : f32
    %19 = vector.broadcast %cst_14 : f32 to vector<16x1xf32>
    %20 = arith.maximumf %18, %19 : vector<16x1xf32>
    %21 = math.rsqrt %20 : vector<16x1xf32>
    %22 = vector.broadcast %21 : vector<16x1xf32> to vector<16x128xf32>
    %23 = arith.mulf %15, %22 : vector<16x128xf32>
    %c0_15 = arith.constant 0 : index
    %c0_16 = arith.constant 0 : index
    %24 = vector.load %arg3[%c0_15, %c0_16] : memref<16x128xbf16, #tpu.memory_space<vmem>>, vector<16x128xbf16>
    %c0_17 = arith.constant 0 : index
    %c0_18 = arith.constant 0 : index
    %25 = vector.load %arg8[%c0_17, %c0_18] : memref<128x128xbf16, #tpu.memory_space<vmem>>, vector<128x128xbf16>
    %c0_19 = arith.constant 0 : index
    %c0_20 = arith.constant 0 : index
    %26 = vector.load %arg9[%c0_19, %c0_20] : memref<1x128xf32, #tpu.memory_space<vmem>>, vector<1x128xf32>
    %c0_21 = arith.constant 0 : index
    %c0_22 = arith.constant 0 : index
    %27 = vector.load %arg10[%c0_21, %c0_22] : memref<128x128xbf16, #tpu.memory_space<vmem>>, vector<128x128xbf16>
    %c0_23 = arith.constant 0 : index
    %c0_24 = arith.constant 0 : index
    %28 = vector.load %arg11[%c0_23, %c0_24] : memref<1x128xf32, #tpu.memory_space<vmem>>, vector<1x128xf32>
    %cst_25 = arith.constant dense<0.000000e+00> : vector<16x128xf32>
    %29 = tpu.matmul %24, %25, %cst_25 {dimension_numbers = #tpu.dot_dimension_numbers<[1], [0], [0], [1], [0, 0, 1, 1], [], []>} : vector<16x128xbf16>, vector<128x128xbf16>, vector<16x128xf32> -> vector<16x128xf32>
    %30 = vector.broadcast %26 : vector<1x128xf32> to vector<16x128xf32>
    %31 = arith.addf %29, %30 : vector<16x128xf32>
    %cst_26 = arith.constant 0.000000e+00 : f32
    %32 = vector.broadcast %cst_26 : f32 to vector<16x128xf32>
    %33 = arith.maximumf %31, %32 : vector<16x128xf32>
    %34 = arith.truncf %33 : vector<16x128xf32> to vector<16x128xbf16>
    %cst_27 = arith.constant dense<0.000000e+00> : vector<16x128xf32>
    %35 = tpu.matmul %34, %27, %cst_27 {dimension_numbers = #tpu.dot_dimension_numbers<[1], [0], [0], [1], [0, 0, 1, 1], [], []>} : vector<16x128xbf16>, vector<128x128xbf16>, vector<16x128xf32> -> vector<16x128xf32>
    %36 = vector.broadcast %28 : vector<1x128xf32> to vector<16x128xf32>
    %37 = arith.addf %35, %36 : vector<16x128xf32>
    %38 = arith.mulf %37, %37 : vector<16x128xf32>
    %cst_28 = arith.constant dense<0.000000e+00> : vector<16xf32>
    %39 = vector.multi_reduction <add>, %38, %cst_28 [1] : vector<16x128xf32> to vector<16xf32>
    %40 = vector.shape_cast %39 : vector<16xf32> to vector<16x1xf32>
    %cst_29 = arith.constant 1.000000e-24 : f32
    %41 = vector.broadcast %cst_29 : f32 to vector<16x1xf32>
    %42 = arith.maximumf %40, %41 : vector<16x1xf32>
    %43 = math.rsqrt %42 : vector<16x1xf32>
    %44 = vector.broadcast %43 : vector<16x1xf32> to vector<16x128xf32>
    %45 = arith.mulf %37, %44 : vector<16x128xf32>
    %46 = vector.broadcast %1 : f32 to vector<16x128xf32>
    %47 = arith.mulf %23, %46 : vector<16x128xf32>
    %48 = arith.truncf %47 : vector<16x128xf32> to vector<16x128xbf16>
    %c0_30 = arith.constant 0 : index
    %c0_31 = arith.constant 0 : index
    %49 = vector.load %arg12[%c0_30, %c0_31] : memref<16x128xbf16, #tpu.memory_space<vmem>>, vector<16x128xbf16>
    tpu.vector_store %arg12[%c0_30, %c0_31], %48 {strides = array<i32>} : memref<16x128xbf16, #tpu.memory_space<vmem>>, vector<16x128xbf16>,
    %50 = arith.truncf %45 : vector<16x128xf32> to vector<16x128xbf16>
    %c0_32 = arith.constant 0 : index
    %c0_33 = arith.constant 0 : index
    %51 = vector.load %arg13[%c0_32, %c0_33] : memref<16x128xbf16, #tpu.memory_space<vmem>>, vector<16x128xbf16>
    tpu.vector_store %arg13[%c0_32, %c0_33], %50 {strides = array<i32>} : memref<16x128xbf16, #tpu.memory_space<vmem>>, vector<16x128xbf16>,
    return
  }
  func.func @transform_0(%arg0: i32) -> i32 {
    %c0_i32 = arith.constant 0 : i32
    %c0_i32_0 = arith.constant 0 : i32
    return %c0_i32 : i32
  }
  func.func @transform_1(%arg0: i32) -> (i32, i32) {
    %c0_i32 = arith.constant 0 : i32
    %c0_i32_0 = arith.constant 0 : i32
    return %arg0, %c0_i32 : i32, i32
  }
  func.func @transform_2(%arg0: i32) -> (i32, i32) {
    %c0_i32 = arith.constant 0 : i32
    %c0_i32_0 = arith.constant 0 : i32
    return %arg0, %c0_i32 : i32, i32
  }
  func.func @transform_3(%arg0: i32) -> (i32, i32) {
    %c0_i32 = arith.constant 0 : i32
    %c0_i32_0 = arith.constant 0 : i32
    %c0_i32_1 = arith.constant 0 : i32
    return %c0_i32, %c0_i32_0 : i32, i32
  }
  func.func @transform_4(%arg0: i32) -> (i32, i32) {
    %c0_i32 = arith.constant 0 : i32
    %c0_i32_0 = arith.constant 0 : i32
    %c0_i32_1 = arith.constant 0 : i32
    return %c0_i32, %c0_i32_0 : i32, i32
  }
  func.func @transform_5(%arg0: i32) -> (i32, i32) {
    %c0_i32 = arith.constant 0 : i32
    %c0_i32_0 = arith.constant 0 : i32
    %c0_i32_1 = arith.constant 0 : i32
    return %c0_i32, %c0_i32_0 : i32, i32
  }
  func.func @transform_6(%arg0: i32) -> (i32, i32) {
    %c0_i32 = arith.constant 0 : i32
    %c0_i32_0 = arith.constant 0 : i32
    %c0_i32_1 = arith.constant 0 : i32
    return %c0_i32, %c0_i32_0 : i32, i32
  }
  func.func @transform_7(%arg0: i32) -> (i32, i32) {
    %c0_i32 = arith.constant 0 : i32
    %c0_i32_0 = arith.constant 0 : i32
    %c0_i32_1 = arith.constant 0 : i32
    return %c0_i32, %c0_i32_0 : i32, i32
  }
  func.func @transform_8(%arg0: i32) -> (i32, i32) {
    %c0_i32 = arith.constant 0 : i32
    %c0_i32_0 = arith.constant 0 : i32
    %c0_i32_1 = arith.constant 0 : i32
    return %c0_i32, %c0_i32_0 : i32, i32
  }
  func.func @transform_9(%arg0: i32) -> (i32, i32) {
    %c0_i32 = arith.constant 0 : i32
    %c0_i32_0 = arith.constant 0 : i32
    %c0_i32_1 = arith.constant 0 : i32
    return %c0_i32, %c0_i32_0 : i32, i32
  }
  func.func @transform_10(%arg0: i32) -> (i32, i32) {
    %c0_i32 = arith.constant 0 : i32
    %c0_i32_0 = arith.constant 0 : i32
    %c0_i32_1 = arith.constant 0 : i32
    return %c0_i32, %c0_i32_0 : i32, i32
  }
  func.func @transform_11(%arg0: i32) -> (i32, i32) {
    %c0_i32 = arith.constant 0 : i32
    %c0_i32_0 = arith.constant 0 : i32
    return %arg0, %c0_i32 : i32, i32
  }
  func.func @transform_12(%arg0: i32) -> (i32, i32) {
    %c0_i32 = arith.constant 0 : i32
    %c0_i32_0 = arith.constant 0 : i32
    return %arg0, %c0_i32 : i32, i32
  }
}

</mosaic_0001>

<bundles_post_ra>
// kernel: tpu_custom_call.1
= control target key start
LH: loop header
LB: loop body
LE: loop exit
PB: predicated region body
PF: predicated region fallthrough
CT: control target
= control target key end

     0   :  { %s2362_s0 = inlined_call_operand.<no memory space> [shape: f32[1], index: 0, kind: input, shape index: {}]   ;;  %s2363_s1 = inlined_call_operand.hbm [shape: bf16[32,128], index: 1, kind: input, shape index: {}]   ;;  %s2364_s2 = inlined_call_operand.hbm [shape: bf16[32,128], index: 2, kind: input, shape index: {}]   ;;  %s2365_s3 = inlined_call_operand.hbm [shape: bf16[128,128], index: 3, kind: input, shape index: {}]   ;;  %s2366_s4 = inlined_call_operand.vmem [shape: f32[1,128], index: 4, kind: input, shape index: {}]   ;;  %s2367_s5 = inlined_call_operand.hbm [shape: bf16[128,128], index: 5, kind: input, shape index: {}]   ;;  %s2368_s6 = inlined_call_operand.vmem [shape: f32[1,128], index: 6, kind: input, shape index: {}]   ;;  %s2369_s7 = inlined_call_operand.hbm [shape: bf16[128,128], index: 7, kind: input, shape index: {}]   ;;  %s2370_s8 = inlined_call_operand.vmem [shape: f32[1,128], index: 8, kind: input, shape index: {}]   ;;  %s2371_s9 = inlined_call_operand.hbm [shape: bf16[128,128], index: 9, kind: input, shape index: {}]   ;;  %s2372_s10 = inlined_call_operand.vmem [shape: f32[1,128], index: 10, kind: input, shape index: {}]   ;;  %s2373_s11 = inlined_call_operand.hbm [shape: bf16[32,128], index: 11, kind: output, shape index: {0}]   ;;  %s2374_s12 = inlined_call_operand.hbm [shape: bf16[32,128], index: 12, kind: output, shape index: {1}]  }
   0x1   :  { %2385 = sst [smem:[#allocation27_spill]] %s2363_s1 }
   0x2   :  { %2386 = sst [smem:[#allocation28_spill]] %s2365_s3 }
   0x3   :  { %2387 = sst [smem:[#allocation29_spill]] %s2367_s5 }
   0x4   :  { %2388 = sst [smem:[#allocation30_spill]] %s2369_s7 }
   0x5   :  { %2389 = sst [smem:[#allocation31_spill]] %s2371_s9 }
   0x6   :  { %18 = sst [smem:[#allocation2]] %s2362_s0 }
   0x7   :  { %19 = vsyncpa [#allocation4], 0 }
   0x8   :  { %21 = vsyncpa [#allocation4 + $0x1], 0 }
   0x9   :  { %22 = vsyncpa [#allocation7], 0 }
   0xa   :  { %24 = vsyncpa [#allocation7 + $0x1], 0 }
   0xb   :  { %25 = vsyncpa [#allocation10], 0 }
   0xc   :  { %26 = vsyncpa [#allocation13], 0 }
   0xd   :  { %27 = vsyncpa [#allocation5], 0 }
   0xe   :  { %29 = vsyncpa [#allocation5 + $0x1], 0 }
   0xf   :  { %30 = vsyncpa [#allocation16], 0 }
  0x10   :  { %32 = vsyncpa [#allocation16 + $0x1], 0  ;;  %s1978_s23 = smov 0   ;;  %s1980_s24 = smov 0  }
  0x11   :  { %s1982_s25 = smov 0   ;;  %s1984_s26 = smov 0  }
  0x12 LB: > { %2390 = sst [smem:[#allocation24_spill]] %s1890_s25  ;;  %s1999_s0 = sadd.s32 4294967295, %s1894_s26   ;;  %s1894_s26 = sphi %s1984_s26, %s2416_s26   ;;  %s1890_s25 = sphi %s1982_s25, %s2418_s25   ;;  %s1886_s24 = sphi %s1980_s24, %s2420_s24   ;;  %s1882_s23 = sphi %s1978_s23, %s2419_s23  }
  0x13   : > { %s1269_s27 = sadd.s32 4294967294, %s1894_s26   ;;  %p79_p0 = scmp.ne.s32.totalorder %s1886_s24, %s1882_s23 }
  0x14   : > { %p2375_p1 = scmp.eq.s32.totalorder %s1999_s0, 0  ;;  %p297_p2 = scmp.eq.s32.totalorder %s1999_s0, 1 }
  0x15   : > { %p303_p3 = scmp.eq.s32.totalorder %s1269_s27, 1  ;;  %p1270_p5 = scmp.ge.s32.totalorder %s1894_s26, 1 }
  0x16   : > { %p2008_p4 = por %p2375_p1, %p79_p0  ;;  %p336_p7 = scmp.lt.s32.totalorder %s1894_s26, 3 }
  0x17   : > { %p2013_p6 = por %p303_p3, %p79_p0  ;;  %s1896_s13 = smov [#allocation8]  }
  0x18   : > { %s2391_s28 = scalar_select %p2008_p4, 1, 0 }
  0x19   : > { %s2392_s29 = scalar_select %p2013_p6, 1, 0 }
  0x1a   : > { %p2018_p8 = pnand %p1270_p5, %p336_p7  ;;  %s351_s14 = sshll.u32 %s1896_s13, 4  ;;  %s352_s14 = int_to_ptr.vmem [resolvable:$true] %s351_s14 }
  0x1b   : > { %s1897_s16 = smov [#allocation9]   ;;  %s1898_s18 = smov [#allocation11]  }
  0x1c   : > { %p1501_p9 = pneg %p2018_p8  ;;  %s367_s17 = sshll.u32 %s1897_s16, 4  ;;  %s368_s17 = int_to_ptr.vmem [resolvable:$true] %s367_s17 }
  0x1d   : > { %s383_s19 = sshll.u32 %s1898_s18, 4  ;;  %s1635_s20 = scalar_lea.vmem %s352_s14, 1024  ;;  %s384_s19 = int_to_ptr.vmem [resolvable:$true] %s383_s19 }
  0x1e   : > { %p2027_p11 = pnand %p1501_p9, %p2375_p1  ;;  %p1636_p13 = scmp.ne.s32.totalorder %s352_s14, %s1635_s20 }
  0x1f   : > { %p1643_p5 = scmp.lt.s32.totalorder %s352_s14, %s352_s14  ;;  %p1644_p7 = scmp.lt.s32.totalorder %s1635_s20, %s1635_s20 }
  0x20   : > { %p1626_p12 = pneg %p2027_p11 }
  0x21   : > { %p1645_p9 = por %p1644_p7, %p1643_p5 }
  0x22   : > { %p1638_p0 = pnand %p1636_p13, %p1626_p12 }
  0x24   : > { %p1639_p3 = pneg %p1638_p0 }
  0x26   : > { %p1646_p10 = pnand %p1645_p9, %p1639_p3 }
  0x28   : > { %1649 = shalt.err (!%p1646_p10)
}
  0x29   : > { %s2376_s21 = smov 64   ;;  %s2378_s22 = smov 4  }
  0x2a   : > { %s2395_s3 = sld [smem:[#allocation28_spill]]  ;;  %s1661_s16 = scalar_lea.vmem %s368_s17, 1024 }
  0x2b   : > { %p1662_p13 = scmp.ne.s32.totalorder %s368_s17, %s1661_s16  ;;  %p1669_p3 = scmp.lt.s32.totalorder %s368_s17, %s368_s17 }
  0x2c   : > { %p1670_p10 = scmp.lt.s32.totalorder %s1661_s16, %s1661_s16 }
  0x2d   : > { %p1664_p0 = pnand %p1662_p13, %p1626_p12 }
  0x2e   : > { %p1671_p7 = por %p1670_p10, %p1669_p3 }
  0x2f   : > { %p1665_p5 = pneg %p1664_p0 }
  0x30   : > { %1504 = dma.hbm_to_vmem [thread:$0]  (!%p2027_p11), %s2395_s3, 1024, %s352_s14, [#allocation7], %s2376_s21, %s2376_s21, %s2378_s22  }
  0x31   : > { %p1672_p9 = pnand %p1671_p7, %p1665_p5 }
  0x33   : > { %1675 = shalt.err (!%p1672_p9)
}
  0x34   : > { %s2396_s5 = sld [smem:[#allocation29_spill]]  ;;  %s1687_s14 = scalar_lea.vmem %s384_s19, 1024 }
  0x35   : > { %p1688_p1 = scmp.ne.s32.totalorder %s384_s19, %s1687_s14  ;;  %p1695_p3 = scmp.lt.s32.totalorder %s384_s19, %s384_s19 }
  0x36   : > { %p1696_p5 = scmp.lt.s32.totalorder %s1687_s14, %s1687_s14 }
  0x37   : > { %p1690_p13 = pnand %p1688_p1, %p1626_p12 }
  0x38   : > { %p1697_p10 = por %p1696_p5, %p1695_p3 }
  0x39   : > { %p1691_p0 = pneg %p1690_p13 }
  0x3a   : > { %1507 = dma.hbm_to_vmem [thread:$0]  (!%p2027_p11), %s2396_s5, 1024, %s368_s17, [#allocation10], %s2376_s21, %s2376_s21, %s2378_s22  }
  0x3b   : > { %p1698_p7 = pnand %p1697_p10, %p1691_p0 }
  0x3d   : > { %1701 = shalt.err (!%p1698_p7)
}
  0x3e   : > { %s2397_s7 = sld [smem:[#allocation30_spill]]  ;;  %s1901_s17 = smov [#allocation12]  }
  0x3f   : > { %s399_s16 = sshll.u32 %s1901_s17, 4  ;;  %s400_s16 = int_to_ptr.vmem [resolvable:$true] %s399_s16 }
  0x40   : > { %s1713_s18 = scalar_lea.vmem %s400_s16, 1024  ;;  %p1721_p0 = scmp.lt.s32.totalorder %s400_s16, %s400_s16 }
  0x41   : > { %p1714_p1 = scmp.ne.s32.totalorder %s400_s16, %s1713_s18  ;;  %p1722_p3 = scmp.lt.s32.totalorder %s1713_s18, %s1713_s18 }
  0x43   : > { %p1716_p9 = pnand %p1714_p1, %p1626_p12  ;;  %p1723_p5 = por %p1722_p3, %p1721_p0 }
  0x44   : > { %1510 = dma.hbm_to_vmem [thread:$0]  (!%p2027_p11), %s2397_s7, 1024, %s384_s19, [#allocation10], %s2376_s21, %s2376_s21, %s2378_s22  }
  0x45   : > { %p1717_p13 = pneg %p1716_p9 }
  0x47   : > { %p1724_p10 = pnand %p1723_p5, %p1717_p13 }
  0x49   : > { %1727 = shalt.err (!%p1724_p10)
}
  0x4a   : > { %s2398_s9 = sld [smem:[#allocation31_spill]]  ;;  %s2078_s14 = sadd.s32 1, %s1894_s26  }
  0x4b   : > { %2399 = sst [smem:[#allocation25_spill]] %s2078_s14  ;;  %s66_s15 = sadd.s32 1, %s1890_s25 }
  0x4c   : > { %s63_s27 = ssub.s32 %s1894_s26, %s2078_s14  ;;  %p73_p12 = scmp.ne.s32.totalorder %s1890_s25, %s1886_s24 }
  0x4d   : > { %p64_p7 = scmp.eq.s32.totalorder %s63_s27, 0  ;;  %p74_p1 = scmp.eq.s32.totalorder %s1894_s26, 0 }
  0x4e   : > { %p2088_p9 = por %p297_p2, %p73_p12  ;;  %p1532_p13 = scmp.lt.s32.totalorder %s1894_s26, 2 }
  0x4f   : > { %s2094_s17 = scalar_select %p64_p7, %s1890_s25, %s66_s15  }
  0x50   : > { %1513 = dma.hbm_to_vmem [thread:$0]  (!%p2027_p11), %s2398_s9, 1024, %s400_s16, [#allocation13], %s2376_s21, %s2376_s21, %s2378_s22  }
  0x51   : > { %s2400_s13 = scalar_select %p2088_p9, 1, 0 }
  0x52   : > { %2401 = sst [smem:[#allocation26_spill]] %s2094_s17  ;;  %p75_p0 = por %p74_p1, %p73_p12 }
  0x53   : > { %s416_s18 = sand.u32 1, %s1890_s25   ;;  %s1341_s16 = sshll.u32 %s1894_s26, 7 }
  0x54   : > { %s1276_s19 = sshll.u32 %s416_s18, 3  ;;  %s2402_s1 = sld [smem:[#allocation27_spill]] }
  0x55   : > { %s420_s27 = scalar_lea.vmem [#allocation3], %s1276_s19  ;;  %p2105_p2 = pnand %p1532_p13, %p75_p0 }
  0x56   : > { %s427_s3 = sshll.u32 %s420_s27, 4  ;;  %s2112_s9 = scalar_lea.hbm %s2364_s2, %s1341_s16  ;;  %s2103_s3 = int_to_ptr.vmem [resolvable:$true] %s427_s3 }
  0x57   : > { %s441_s21 = scalar_lea.vmem [#allocation6], %s1276_s19  ;;  %s2116_s17 = scalar_lea.sflag [#allocation4], %s416_s18 }
  0x58   : > { %s2114_s20 = sshll.u32 %s441_s21, 4  ;;  %p1730_p3 = pneg %p2105_p2  ;;  %s2147_s20 = int_to_ptr.vmem [resolvable:$true] %s2114_s20 }
  0x5a   : > { %s2101_s22 = scalar_lea.hbm %s2402_s1, %s1341_s16  ;;  %s1733_s7 = scalar_lea.hbm %s2402_s1, 256 }
  0x5b   : > { %s1728_s25 = scalar_lea.hbm %s2101_s22, 128  ;;  %p1734_p12 = scmp.lt.s32.totalorder %s2101_s22, %s2402_s1 }
  0x5c   : > { %p1729_p11 = scmp.ne.s32.totalorder %s2101_s22, %s1728_s25  ;;  %p1735_p7 = scmp.lt.s32.totalorder %s1733_s7, %s1728_s25 }
  0x5e   : > { %p1731_p5 = pnand %p1730_p3, %p1729_p11  ;;  %p1736_p1 = por %p1735_p7, %p1734_p12 }
  0x60   : > { %p1732_p10 = pneg %p1731_p5 }
  0x62   : > { %p1737_p13 = pnand %p1736_p1, %p1732_p10 }
  0x64   : > { %1740 = shalt.err (!%p1737_p13)
}
  0x65   : > { %s1741_s18 = scalar_lea.vmem %s2103_s3, 128  ;;  %s1902_s14 = smov [#allocation3]  }
  0x66   : > { %p1742_p0 = scmp.ne.s32.totalorder %s2103_s3, %s1741_s18  ;;  %s1746_s19 = sshll.u32 %s1902_s14, 4  ;;  %s1747_s19 = int_to_ptr.vmem [resolvable:$false] %s1746_s19 }
  0x67   : > { %s1748_s21 = scalar_lea.vmem %s1747_s19, 256  ;;  %p1749_p6 = scmp.lt.s32.totalorder %s2103_s3, %s1747_s19 }
  0x68   : > { %p1744_p11 = pnand %p1742_p0, %p1730_p3  ;;  %p1750_p9 = scmp.lt.s32.totalorder %s1748_s21, %s1741_s18 }
  0x6a   : > { %p1745_p5 = pneg %p1744_p11  ;;  %p1751_p4 = por %p1750_p9, %p1749_p6 }
  0x6c   : > { %p1752_p12 = pnand %p1751_p4, %p1745_p5 }
  0x6e   : > { %1755 = shalt.err (!%p1752_p12)
}
  0x6f   : > { %s2404_s25 = smov 4   ;;  %s2405_s27 = smov 64  }
  0x70   : > { %1517 = dma.hbm_to_vmem [thread:$0]  (!%p2105_p2), %s2101_s22, 128, %s2103_s3, %s2116_s17, %s2405_s27, %s2405_s27, %s2404_s25  }
  0x71   : > { %s437_s7 = sand.u32 1, %s1894_s26   ;;  %s1756_s16 = scalar_lea.hbm %s2112_s9, 128 }
  0x72   : > { %s438_s15 = scalar_lea.sflag [#allocation7], %s437_s7  ;;  %p1757_p4 = scmp.ne.s32.totalorder %s2112_s9, %s1756_s16 }
  0x73   : > { %s1761_s19 = scalar_lea.hbm %s2364_s2, 256  ;;  %p1762_p10 = scmp.lt.s32.totalorder %s2112_s9, %s2364_s2 }
  0x74   : > { %p1759_p6 = pnand %p1757_p4, %p1730_p3  ;;  %p1763_p7 = scmp.lt.s32.totalorder %s1761_s19, %s1756_s16 }
  0x76   : > { %p1760_p9 = pneg %p1759_p6  ;;  %p1764_p1 = por %p1763_p7, %p1762_p10 }
  0x78   : > { %p1765_p13 = pnand %p1764_p1, %p1760_p9 }
  0x7a   : > { %1768 = shalt.err (!%p1765_p13)
}
  0x7b   : > { %s1769_s3 = scalar_lea.vmem %s2147_s20, 128  ;;  %s1903_s22 = smov [#allocation6]  }
  0x7c   : > { %p1770_p0 = scmp.ne.s32.totalorder %s2147_s20, %s1769_s3  ;;  %s1774_s17 = sshll.u32 %s1903_s22, 4  ;;  %s1775_s17 = int_to_ptr.vmem [resolvable:$false] %s1774_s17 }
  0x7d   : > { %s1776_s7 = scalar_lea.vmem %s1775_s17, 256  ;;  %p1777_p12 = scmp.lt.s32.totalorder %s2147_s20, %s1775_s17 }
  0x7e   : > { %p1772_p11 = pnand %p1770_p0, %p1730_p3  ;;  %p1778_p4 = scmp.lt.s32.totalorder %s1776_s7, %s1769_s3 }
  0x80   : > { %p1773_p5 = pneg %p1772_p11  ;;  %p1779_p6 = por %p1778_p4, %p1777_p12 }
  0x82   : > { %p1780_p10 = pnand %p1779_p6, %p1773_p5 }
  0x84   : > { %1783 = shalt.err (!%p1780_p10)
}
  0x85   : > { %1520 = dma.hbm_to_vmem [thread:$0]  (!%p2105_p2), %s2112_s9, 128, %s2147_s20, %s438_s15, %s2405_s27, %s2405_s27, %s2404_s25  }
  0x86   : > { %460 = sbr.rel (%p2018_p8) target bundleno = 801 (0x321), region = 64  ;;  %s2178_s1 = sand.u32 (!%p2018_p8), 1, %s1886_s24  }
  0x87   : > { %s2181_s16 = sshll.u32 (!%p2018_p8), %s2178_s1, 3  ;;  %s463_s18 = scalar_lea.sflag (!%p2018_p8), [#allocation4], %s2178_s1 }
  0x88   : > { %s466_s5 = scalar_lea.vmem (!%p2018_p8), [#allocation3], %s2181_s16  ;;  %p2406_p3 = scmp.ne.s32.totalorder (!%p2018_p8), %s2391_s28, 0 }
  0x8b   : > { %1853 = dma.done.wait (%p2406_p3), %s463_s18, 128  }
  0x8c   : > { %1855 = vsyncadd (%p2406_p3), %s463_s18, 4294967168  ;;  %s471_s9 = sand.u32 1, %s1999_s0   ;;  %s475_s20 = scalar_lea.vmem [#allocation6], %s2181_s16 }
  0x8d   : > { %s472_s30 = scalar_lea.sflag [#allocation7], %s471_s9 }
  0x8e   : > { %1857 = dma.done.wait (%p2406_p3), %s472_s30, 128  }
  0x8f   : > { %1859 = vsyncadd (%p2406_p3), %s472_s30, 4294967168  ;;  %p2407_p8 = scmp.eq.s32.totalorder %s1999_s0, 0 }
  0x91   : > { %1861 = dma.done.wait (%p2407_p8), [#allocation7], 1024   ;;  %p2408_p2 = pmov %p2407_p8 }
  0x93   : > { %1863 = vsyncadd (%p2408_p2), [#allocation7], 4294966272  ;;  %p2409_p9 = pmov %p2408_p2 }
  0x94   : > { %p2410_p7 = pmov %p2408_p2 }
  0x95   : > { %1865 = dma.done.wait (%p2409_p9), [#allocation10], 2048  }
  0x96   : > { %1867 = vsyncadd (%p2410_p7), [#allocation10], 4294965248  ;;  %p2411_p1 = pmov %p2408_p2 }
  0x98   : > { %1869 = dma.done.wait (%p2411_p1), [#allocation13], 1024   ;;  %p2412_p13 = pmov %p2411_p1 }
  0x99   : > { %v1904_v0 = vmov 0.0   ;;  %vm1905_vm0 = vmmov 0   ;;  %v1580_v1 = vld [vmem:[#allocation8 + $0x38] sm:$0xff]   ;;  %v1581_v2 = vld [vmem:[#allocation8 + $0x30] sm:$0xff]   ;;  %v1582_v3 = vld [vmem:[#allocation8 + $0x28] sm:$0xff]   ;;  %s547_s14 = sld [smem:[#allocation2]] }
  0x9a   : > { %1871 = vsyncadd (%p2412_p13), [#allocation13], 4294966272  ;;  %1395 = vmatprep.subr.bf16.mxu0 %v1904_v0  ;;  %1411 = vmatprep.mubr.msk.bf16.mxu0 %vm1905_vm0, %v1904_v0  ;;  %v1583_v4 = vld [vmem:[#allocation8 + $0x20] sm:$0xff]   ;;  %v1584_v5 = vld [vmem:[#allocation8 + $0x18] sm:$0xff]   ;;  %s534_s7 = scalar_lea.vmem [#allocation14], %s2181_s16  ;;  %s1069_s28 = scalar_lea.sflag [#allocation5], %s2178_s1 }
  0x9b   : > { %1415 = vmatprep.subr.bf16.mxu1 %v1904_v0  ;;  %1431 = vmatprep.mubr.msk.bf16.mxu1 %vm1905_vm0, %v1904_v0  ;;  %v1585_v6 = vld [vmem:[#allocation8 + $0x10] sm:$0xff]   ;;  %v1598_v7 = vld [vmem:[#allocation9 + $0x38] sm:$0xff]   ;;  %v1586_v9 = vld [vmem:[#allocation8 + $0x8] sm:$0xff]   ;;  %s1087_s18 = sshll.u32 %s534_s7, 4  ;;  %p2413_p11 = scmp.ne.s32.totalorder %s2400_s13, 0  ;;  %s2273_s18 = int_to_ptr.vmem [resolvable:$true] %s1087_s18 }
  0x9c   : > { %1396 = vmatpush3.bf16.msra.mxu0 %v1580_v1  ;;  %1416 = vmatpush3.bf16.msra.mxu1 %v1598_v7  ;;  %v1599_v8 = vld [vmem:[#allocation9 + $0x30] sm:$0xff]   ;;  %v1600_v10 = vld [vmem:[#allocation9 + $0x28] sm:$0xff]   ;;  %v1587_v11 = vld [vmem:[#allocation8] sm:$0xff]   ;;  %s1784_s25 = scalar_lea.vmem %s2273_s18, 128  ;;  %s1906_s27 = smov [#allocation14]  }
  0x9d   : > { %1397 = vmatprep.subr.bf16.mxu0 %v1904_v0  ;;  %1417 = vmatprep.subr.bf16.mxu1 %v1904_v0  ;;  %v1601_v12 = vld [vmem:[#allocation9 + $0x20] sm:$0xff]   ;;  %v1589_v14 = vld [vmem:[#allocation11 + $0x38] sm:$0xff]   ;;  %v1590_v16 = vld [vmem:[#allocation11 + $0x30] sm:$0xff]   ;;  %p1785_p0 = scmp.ne.s32.totalorder %s2273_s18, %s1784_s25  ;;  %s1788_s15 = sshll.u32 %s1906_s27, 4  ;;  %s1789_s15 = int_to_ptr.vmem [resolvable:$false] %s1788_s15 }
  0x9e   : > { %v1588_v13 = vld [vmem:[%s466_s5] sm:$0xff]   ;;  %v1602_v15 = vld [vmem:[#allocation9 + $0x18] sm:$0xff]   ;;  %v1594_v20 = vld [vmem:[#allocation11 + $0x10] sm:$0xff]   ;;  %s1347_s5 = sshll.u32 %s1999_s0, 7  ;;  %p1791_p4 = scmp.lt.s32.totalorder %s2273_s18, %s1789_s15 }
  0x9f   : > { %v1591_v17 = vld [vmem:[#allocation11 + $0x28] sm:$0xff]   ;;  %v1592_v18 = vld [vmem:[#allocation11 + $0x20] sm:$0xff]   ;;  %v1593_v19 = vld [vmem:[#allocation11 + $0x18] sm:$0xff]   ;;  %v548_v55 = vstv %s547_s14  ;;  %p1786_p5 = pnand %p1785_p0, %p2413_p11  ;;  %s1790_s14 = scalar_lea.vmem %s1789_s15, 256 }
  0xa0   : > { %1398 = vmatpush3.bf16.msra.mxu0 %v1581_v2  ;;  %1418 = vmatpush3.bf16.msra.mxu1 %v1599_v8  ;;  %v1595_v21 = vld [vmem:[#allocation11 + $0x8] sm:$0xff]   ;;  %v1596_v22 = vld [vmem:[#allocation11] sm:$0xff]   ;;  %v1597_v23 = vld [vmem:[%s475_s20] sm:$0xff]   ;;  %1614 = vrcp.f32 %v548_v55  ;;  %s2280_s20 = scalar_lea.hbm %s2373_s11, %s1347_s5  ;;  %p1792_p6 = scmp.lt.s32.totalorder %s1790_s14, %s1784_s25 }
  0xa1   : > { %1399 = vmatprep.subr.bf16.mxu0 %v1904_v0  ;;  %1419 = vmatprep.subr.bf16.mxu1 %v1904_v0  ;;  %v1603_v24 = vld [vmem:[#allocation9 + $0x10] sm:$0xff]   ;;  %v1604_v25 = vld [vmem:[#allocation9 + $0x8] sm:$0xff]   ;;  %v1605_v26 = vld [vmem:[#allocation9] sm:$0xff]   ;;  %p1787_p12 = pneg %p1786_p5 }
  0xa2   : > { %v1291_v27 = vld [vmem:[%s2366_s4] ss:$0 sm:$0xff]  ;;  %v1606_v36 = vld [vmem:[#allocation12 + $0x38] sm:$0xff]   ;;  %v1607_v38 = vld [vmem:[#allocation12 + $0x30] sm:$0xff]   ;;  %p1793_p10 = por %p1792_p6, %p1791_p4 }
  0xa3   : > { %v1608_v39 = vld [vmem:[#allocation12 + $0x28] sm:$0xff]   ;;  %v1609_v40 = vld [vmem:[#allocation12 + $0x20] sm:$0xff]   ;;  %v1610_v41 = vld [vmem:[#allocation12 + $0x18] sm:$0xff]  }
  0xa4   : > { %1400 = vmatpush3.bf16.msra.mxu0 %v1582_v3  ;;  %1420 = vmatpush3.bf16.msra.mxu1 %v1600_v10  ;;  %v1611_v42 = vld [vmem:[#allocation12 + $0x10] sm:$0xff]   ;;  %v1310_v43 = vld [vmem:[%s2370_s8] ss:$0 sm:$0xff]  ;;  %v1612_v45 = vld [vmem:[#allocation12 + $0x8] sm:$0xff]   ;;  %p1794_p3 = pnand %p1793_p10, %p1787_p12 }
  0xa5   : > { %1401 = vmatprep.subr.bf16.mxu0 %v1904_v0  ;;  %1421 = vmatprep.subr.bf16.mxu1 %v1904_v0  ;;  %v1613_v49 = vld [vmem:[#allocation12] sm:$0xff]  }
  0xa6   : > { %v1301_v57 = vld [vmem:[%s2368_s6] ss:$0 sm:$0xff] }
  0xa7   : > { %v1320_v2 = vld [vmem:[%s2372_s10] ss:$0 sm:$0xff] }
  0xa8   : > { %1402 = vmatpush3.bf16.msra.mxu0 %v1583_v4  ;;  %1422 = vmatpush3.bf16.msra.mxu1 %v1601_v12 }
  0xa9   : > { %1403 = vmatprep.subr.bf16.mxu0 %v1904_v0  ;;  %1423 = vmatprep.subr.bf16.mxu1 %v1904_v0 }
  0xac   : > { %1404 = vmatpush3.bf16.msra.mxu0 %v1584_v5  ;;  %1424 = vmatpush3.bf16.msra.mxu1 %v1602_v15 }
  0xad   : > { %1405 = vmatprep.subr.bf16.mxu0 %v1904_v0  ;;  %1425 = vmatprep.subr.bf16.mxu1 %v1904_v0  ;;  %v1615_v56 = vpop.eup %1614 }
  0xae   : > { %1475 = vpush %v1615_v56 }
  0xb0   : > { %1406 = vmatpush3.bf16.msra.mxu0 %v1585_v6  ;;  %1426 = vmatpush3.bf16.msra.mxu1 %v1603_v24 }
  0xb1   : > { %1407 = vmatprep.subr.bf16.mxu0 %v1904_v0  ;;  %1427 = vmatprep.subr.bf16.mxu1 %v1904_v0 }
  0xb4   : > { %1408 = vmatpush3.bf16.msra.mxu0 %v1586_v9  ;;  %1428 = vmatpush3.bf16.msra.mxu1 %v1604_v25 }
  0xb5   : > { %1409 = vmatprep.subr.bf16.mxu0 %v1904_v0  ;;  %1429 = vmatprep.subr.bf16.mxu1 %v1904_v0 }
  0xb8   : > { %1410 = vmatpush3.bf16.msra.mxu0 %v1587_v11  ;;  %1430 = vmatpush3.bf16.msra.mxu1 %v1605_v26 }
  0xb9   : > { %1435 = vmatprep.subr.bf16.mxu0 %v1904_v0  ;;  %1455 = vmatprep.subr.bf16.mxu1 %v1904_v0 }
  0xbb   : > { %1412 = vmatmul.mubr.bf16.vlgmr.msra.gmra.mxu0 %v1588_v13 }
  0xbc   : > { %1436 = vmatpush3.bf16.msra.mxu0 %v1589_v14  ;;  %1451 = vmatprep.mubr.msk.bf16.mxu0 %vm1905_vm0, %v1904_v0 }
  0xbd   : > { %1437 = vmatprep.subr.bf16.mxu0 %v1904_v0 }
  0xc0   : > { %1438 = vmatpush3.bf16.msra.mxu0 %v1590_v16 }
  0xc1   : > { %1439 = vmatprep.subr.bf16.mxu0 %v1904_v0 }
  0xc4   : > { %1440 = vmatpush3.bf16.msra.mxu0 %v1591_v17 }
  0xc5   : > { %1441 = vmatprep.subr.bf16.mxu0 %v1904_v0 }
  0xc8   : > { %1442 = vmatpush3.bf16.msra.mxu0 %v1592_v18 }
  0xc9   : > { %1443 = vmatprep.subr.bf16.mxu0 %v1904_v0 }
  0xcc   : > { %1444 = vmatpush3.bf16.msra.mxu0 %v1593_v19 }
  0xcd   : > { %1445 = vmatprep.subr.bf16.mxu0 %v1904_v0 }
  0xd0   : > { %1446 = vmatpush3.bf16.msra.mxu0 %v1594_v20 }
  0xd1   : > { %1447 = vmatprep.subr.bf16.mxu0 %v1904_v0 }
  0xd4   : > { %1448 = vmatpush3.bf16.msra.mxu0 %v1595_v21 }
  0xd5   : > { %1449 = vmatprep.subr.bf16.mxu0 %v1904_v0 }
  0xd8   : > { %1450 = vmatpush3.bf16.msra.mxu0 %v1596_v22 }
  0xdb   : > { %1452 = vmatmul.mubr.bf16.vlgmr.msra.gmra.mxu0 %v1597_v23 }
  0xdf   : > { %s1476_s17 = spop %1475 }
  0xe0   : > { %v1045_v18 = vstv %s1476_s17 }
 0x17b   : > { %v681_v28 = vpop.f32.mrf.mxu0 }
 0x17c   : > { %v682_v30 = vadd.f32 %v1291_v27, %v681_v28 }
 0x17d   : > { %v1413_v29 = vpop.f32.mrf.mxu0 }
 0x17e   : > { %v688_v34 = vmax.f32 %v682_v30, 0.0 }
 0x17f   : > { %v684_v31 = vpop.f32.mrf.mxu0 }
 0x180   : > { %v685_v32 = vadd.f32 %v1291_v27, %v684_v31 }
 0x181   : > { %v1414_v33 = vpop.f32.mrf.mxu0 }
 0x182   : > { %v689_v35 = vmax.f32 %v685_v32, 0.0 }
 0x184   : > { %v690_v37 = vpack.c.bf16 %v689_v35, %v688_v34 }
 0x186   : > { %1432 = vmatmul.mubr.bf16.vlgmr.msra.gmra.mxu1 %v690_v37 }
 0x187   : > { %1456 = vmatpush3.bf16.msra.mxu1 %v1606_v36  ;;  %1471 = vmatprep.mubr.msk.bf16.mxu1 %vm1905_vm0, %v1904_v0 }
 0x188   : > { %1457 = vmatprep.subr.bf16.mxu1 %v1904_v0 }
 0x18b   : > { %1458 = vmatpush3.bf16.msra.mxu1 %v1607_v38 }
 0x18c   : > { %1459 = vmatprep.subr.bf16.mxu1 %v1904_v0 }
 0x18f   : > { %1460 = vmatpush3.bf16.msra.mxu1 %v1608_v39 }
 0x190   : > { %1461 = vmatprep.subr.bf16.mxu1 %v1904_v0 }
 0x193   : > { %1462 = vmatpush3.bf16.msra.mxu1 %v1609_v40 }
 0x194   : > { %1463 = vmatprep.subr.bf16.mxu1 %v1904_v0 }
 0x197   : > { %1464 = vmatpush3.bf16.msra.mxu1 %v1610_v41 }
 0x198   : > { %1465 = vmatprep.subr.bf16.mxu1 %v1904_v0 }
 0x19b   : > { %v928_v44 = vpop.f32.mrf.mxu0  ;;  %1466 = vmatpush3.bf16.msra.mxu1 %v1611_v42 }
 0x19c   : > { %1467 = vmatprep.subr.bf16.mxu1 %v1904_v0  ;;  %v929_v47 = vadd.f32 %v1310_v43, %v928_v44 }
 0x19d   : > { %v1453_v46 = vpop.f32.mrf.mxu0 }
 0x19e   : > { %v935_v52 = vmax.f32 %v929_v47, 0.0 }
 0x19f   : > { %v931_v48 = vpop.f32.mrf.mxu0  ;;  %1468 = vmatpush3.bf16.msra.mxu1 %v1612_v45 }
 0x1a0   : > { %v932_v50 = vadd.f32 %v1310_v43, %v931_v48  ;;  %1469 = vmatprep.subr.bf16.mxu1 %v1904_v0 }
 0x1a1   : > { %v1454_v51 = vpop.f32.mrf.mxu0 }
 0x1a2   : > { %v936_v53 = vmax.f32 %v932_v50, 0.0 }
 0x1a3   : > { %1470 = vmatpush3.bf16.msra.mxu1 %v1613_v49 }
 0x1a4   : > { %v937_v54 = vpack.c.bf16 %v936_v53, %v935_v52 }
 0x1a6   : > { %1472 = vmatmul.mubr.bf16.vlgmr.msra.gmra.mxu1 %v937_v54 }
 0x246   : > { %v779_v58 = vpop.f32.mrf.mxu1 }
 0x247   : > { %v780_v59 = vadd.f32 %v1301_v57, %v779_v58 }
 0x248   : > { %v1433_v60 = vpop.f32.mrf.mxu1 }
 0x249   : > { %v786_v61 = vmul.f32 %v780_v59, %v780_v59 }
 0x24a   : > { %v782_v62 = vpop.f32.mrf.mxu1 }
 0x24b   : > { %v783_v63 = vadd.f32 %v1301_v57, %v782_v62  ;;  %788 = vadd.xlane.f32.xlu0 %v786_v61 }
 0x24c   : > { %v1434_v0 = vpop.f32.mrf.mxu1 }
 0x24d   : > { %v787_v1 = vmul.f32 %v783_v63, %v783_v63 }
 0x24f   : > { %790 = vadd.xlane.f32.xlu0 %v787_v1 }
 0x266   : > { %v1026_v3 = vpop.f32.mrf.mxu1 }
 0x267   : > { %v2263_v4 = vadd.f32 %v1320_v2, %v1026_v3 }
 0x268   : > { %v1473_v5 = vpop.f32.mrf.mxu1 }
 0x269   : > { %v1033_v6 = vmul.f32 %v2263_v4, %v2263_v4 }
 0x26a   : > { %v1029_v7 = vpop.f32.mrf.mxu1 }
 0x26b   : > { %v2267_v8 = vadd.f32 %v1320_v2, %v1029_v7  ;;  %1035 = vadd.xlane.f32.xlu1 %v1033_v6 }
 0x26c   : > { %v1474_v9 = vpop.f32.mrf.mxu1 }
 0x26d   : > { %v1034_v10 = vmul.f32 %v2267_v8, %v2267_v8 }
 0x26f   : > { %1037 = vadd.xlane.f32.xlu1 %v1034_v10 }
 0x2d4   : > { %v789_v11 = vpop.xlane.xlu0 %788 }
 0x2d5   : > { %v792_v12 = vmax.f32 %v789_v11, 1e-24 }
 0x2d7   : > { %1616 = vrsqrt.f32 %v792_v12 }
 0x2d8   : > { %v791_v13 = vpop.xlane.xlu0 %790 }
 0x2d9   : > { %v793_v14 = vmax.f32 %v791_v13, 1e-24 }
 0x2db   : > { %1618 = vrsqrt.f32 %v793_v14 }
 0x2e4   : > { %v1617_v15 = vpop.eup %1616 }
 0x2e5   : > { %v796_v16 = vmul.f32 %v1617_v15, %v780_v59 }
 0x2e7   : > { %v1046_v20 = vmul.f32 %v1045_v18, %v796_v16 }
 0x2e8   : > { %v1619_v17 = vpop.eup %1618 }
 0x2e9   : > { %v797_v19 = vmul.f32 %v1619_v17, %v783_v63 }
 0x2eb   : > { %v1047_v21 = vmul.f32 %v1045_v18, %v797_v19 }
 0x2ed   : > { %v1352_v22 = vpack.c.bf16 %v1047_v21, %v1046_v20 }
 0x2ef   : > { %1353 = vst [vmem:[%s534_s7] sm:$0xff] %v1352_v22  }
 0x2f0   : > { %1797 = shalt.err (!%p1794_p3)
}
 0x2f1   : > { %s1798_s19 = scalar_lea.hbm %s2280_s20, 128  ;;  %s1802_s22 = scalar_lea.hbm %s2373_s11, 256 }
 0x2f2   : > { %p1799_p8 = scmp.ne.s32.totalorder %s2280_s20, %s1798_s19  ;;  %p1803_p7 = scmp.lt.s32.totalorder %s2280_s20, %s2373_s11 }
 0x2f3   : > { %p1804_p1 = scmp.lt.s32.totalorder %s1802_s22, %s1798_s19 }
 0x2f4   : > { %p1800_p2 = pnand %p1799_p8, %p2413_p11 }
 0x2f5   : > { %p1805_p13 = por %p1804_p1, %p1803_p7 }
 0x2f6   : > { %p1801_p9 = pneg %p1800_p2 }
 0x2f8   : > { %p1806_p0 = pnand %p1805_p13, %p1801_p9 }
 0x2fa   : > { %1809 = shalt.err (!%p1806_p0)
}
 0x2fb   : > { %s1907_s9 = smov 64   ;;  %s1908_s30 = smov 4   ;;  %v1036_v23 = vpop.xlane.xlu1 %1035 }
 0x2fc   : > { %1497 = dma.vmem_to_hbm [thread:$0]  (%p2413_p11), %s2273_s18, 128, %s2280_s20, %s1069_s28, %s1907_s9, %s1907_s9, %s1908_s30   ;;  %v1039_v24 = vmax.f32 %v1036_v23, 1e-24 }
 0x2fd   : > { %s541_s25 = scalar_lea.vmem [#allocation15], %s2181_s16  ;;  %s2316_s20 = scalar_lea.hbm %s2374_s12, %s1347_s5 }
 0x2fe   : > { %1620 = vrsqrt.f32 %v1039_v24  ;;  %s1103_s27 = sshll.u32 %s541_s25, 4  ;;  %s1074_s28 = scalar_lea.sflag [#allocation16], %s2178_s1  ;;  %s2318_s27 = int_to_ptr.vmem [resolvable:$true] %s1103_s27 }
 0x2ff   : > { %v1038_v25 = vpop.xlane.xlu1 %1037  ;;  %s1810_s16 = scalar_lea.vmem %s2318_s27, 128  ;;  %s1909_s14 = smov [#allocation15]  }
 0x300   : > { %v1040_v26 = vmax.f32 %v1038_v25, 1e-24  ;;  %p1811_p5 = scmp.ne.s32.totalorder %s2318_s27, %s1810_s16  ;;  %s1814_s19 = sshll.u32 %s1909_s14, 4  ;;  %s1815_s19 = int_to_ptr.vmem [resolvable:$false] %s1814_s19 }
 0x301   : > { %s1816_s0 = scalar_lea.vmem %s1815_s19, 256  ;;  %p1817_p6 = scmp.lt.s32.totalorder %s2318_s27, %s1815_s19 }
 0x302   : > { %1622 = vrsqrt.f32 %v1040_v26  ;;  %p1812_p12 = pnand %p1811_p5, %p2413_p11  ;;  %p1818_p10 = scmp.lt.s32.totalorder %s1816_s0, %s1810_s16 }
 0x304   : > { %p1813_p4 = pneg %p1812_p12  ;;  %p1819_p3 = por %p1818_p10, %p1817_p6 }
 0x306   : > { %p1820_p8 = pnand %p1819_p3, %p1813_p4 }
 0x30b   : > { %v1621_v27 = vpop.eup %1620 }
 0x30c   : > { %v1043_v29 = vmul.f32 %v1621_v27, %v2263_v4 }
 0x30f   : > { %v1623_v28 = vpop.eup %1622 }
 0x310   : > { %v1044_v30 = vmul.f32 %v1623_v28, %v2267_v8 }
 0x312   : > { %v1357_v31 = vpack.c.bf16 %v1044_v30, %v1043_v29 }
 0x314   : > { %1358 = vst [vmem:[%s541_s25] sm:$0xff] %v1357_v31  }
 0x315   : > { %1823 = shalt.err (!%p1820_p8)
}
 0x316   : > { %s1824_s5 = scalar_lea.hbm %s2316_s20, 128  ;;  %s1828_s3 = scalar_lea.hbm %s2374_s12, 256 }
 0x317   : > { %p1825_p2 = scmp.ne.s32.totalorder %s2316_s20, %s1824_s5  ;;  %p1829_p1 = scmp.lt.s32.totalorder %s2316_s20, %s2374_s12 }
 0x318   : > { %p1830_p13 = scmp.lt.s32.totalorder %s1828_s3, %s1824_s5 }
 0x319   : > { %p1826_p9 = pnand %p1825_p2, %p2413_p11 }
 0x31a   : > { %p1831_p0 = por %p1830_p13, %p1829_p1 }
 0x31b   : > { %p1827_p7 = pneg %p1826_p9 }
 0x31d   : > { %p1832_p5 = pnand %p1831_p0, %p1827_p7 }
 0x31f   : > { %1835 = shalt.err (!%p1832_p5)
}
 0x320   : > { %1498 = dma.vmem_to_hbm [thread:$0]  (%p2413_p11), %s2318_s27, 128, %s2316_s20, %s1074_s28, %s1907_s9, %s1907_s9, %s1908_s30  }
 0x321 PF: > { %s1118_s7 = sand.u32 1, %s1882_s23   ;;  %p2414_p12 = scmp.ne.s32.totalorder %s2392_s29, 0 }
 0x322   : > { %p2415_p4 = scmp.ge.s32.totalorder %s1894_s26, 2  ;;  %s1119_s25 = scalar_lea.sflag [#allocation5], %s1118_s7 }
 0x324   : > { %p1522_p6 = pnand %p2415_p4, %p2414_p12 }
 0x326   : > { %p1523_p10 = pneg %p1522_p6 }
 0x328   : > { %1873 = dma.done.wait (%p1523_p10), %s1119_s25, 128  }
 0x329   : > { %1875 = vsyncadd (%p1523_p10), %s1119_s25, 4294967168  ;;  %s1128_s15 = scalar_lea.sflag [#allocation16], %s1118_s7 }
 0x32a   : > { %1877 = dma.done.wait (%p1523_p10), %s1128_s15, 128  }
 0x32b   : > { %1879 = vsyncadd (%p1523_p10), %s1128_s15, 4294967168  ;;  %s2416_s26 = sld [smem:[#allocation25_spill]]  ;;  %s2419_s23 = smov %s1886_s24 }
 0x32c   : > { %s2417_s13 = sld [smem:[#allocation24_spill]] }
 0x32d   : > { %s2418_s25 = sld [smem:[#allocation26_spill]] }
 0x331   : > { %p35_p11 = scmp.ge.s32.totalorder %s2416_s26, 4  }
 0x332   : > { %s2420_s24 = smov %s2417_s13 }
 0x333   :  { %37 = sbr.rel (!%p35_p11) target bundleno = 18 (0x12), region = 155 }
 0x338   :  { %1133 = vsyncpa [#allocation4], 1 }
 0x339   :  { %1135 = vsyncpa [#allocation4 + $0x1], 1 }
 0x33a   :  { %1136 = vsyncpa [#allocation7], 1 }
 0x33b   :  { %1138 = vsyncpa [#allocation7 + $0x1], 1 }
 0x33c   :  { %1139 = vsyncpa [#allocation10], 1 }
 0x33d   :  { %1140 = vsyncpa [#allocation13], 1 }
 0x33e   :  { %1141 = vsyncpa [#allocation5], 1 }
 0x33f   :  { %1143 = vsyncpa [#allocation5 + $0x1], 1 }
 0x340   :  { %1144 = vsyncpa [#allocation16], 1 }
 0x341   :  { %1146 = vsyncpa [#allocation16 + $0x1], 1 }

</bundles_post_ra>
